<compile_context>
chip_gen: v6e
topology: v6e:2x2x1
jax: 0.10.0
libtpu: 0.0.40
codegen_flags: <defaults>
</compile_context>

<pallas_src>
import functools
import math

import jax
import jax.numpy as jnp
import numpy as np
from jax import lax
from jax.experimental import pallas as pl
from jax.experimental.pallas import tpu as pltpu


def _round_up(x, m):
    return ((x + m - 1) // m) * m


def _vmem_limit_bytes():
    # ~3/4 of physical VMEM per generation; conservative fallback if the query fails.
    cap = 64 * 1024 * 1024
    try:
        info = pltpu.get_tpu_info()
        cap = int(getattr(info, "vmem_capacity_bytes", cap)) or cap
    except Exception:
        pass
    return max(32 * 1024 * 1024, (cap * 3) // 4)


# --------------------------- stage 1: edge messages --------------------------
# grid = (T, E_tiles): msg[t, e_tile] = relu(x_t[src] + edge_attr @ W_t + b_t)
def _message_kernel(x_ref, ea_ref, src_ref, lin_w_ref, lin_b_ref, msg_ref):
    f32 = jnp.float32
    bf16 = jnp.bfloat16
    te = src_ref.shape[0]
    n_full = x_ref.shape[0]

    # gather x_j = x[src]: exact 0/1 one-hot built directly in bf16, contracted on the MXU.
    # TODO(synk): for graphs where the per-type (N_pad, H) x no longer fits VMEM (v7x 64 MiB),
    # switch to a manual DMA gather of the src rows with memory_space=pl.ANY.
    src_col = src_ref[...]                                           # (te, 1) int32
    n_iota = lax.broadcasted_iota(jnp.int32, (te, n_full), 1)
    gather = (n_iota == src_col).astype(bf16)                        # (te, N_pad) bf16
    xj = jnp.dot(gather, x_ref[...], preferred_element_type=f32)     # (te, H) f32

    ea = jnp.dot(ea_ref[...], lin_w_ref[...],
                 preferred_element_type=f32) + lin_b_ref[...]        # (te, H) f32
    msg_ref[...] = jnp.maximum(xj + ea, 0.0).astype(msg_ref.dtype)   # bf16 to HBM


# ------------------- stage 2: scatter-add + GIN residual MLP -----------------
# grid = (T, N_tiles, E_tiles); E is the reduction axis (last, "arbitrary").
def _scatter_mlp_kernel(dst_ref, msg_ref, x_ref, mlp_w_ref, mlp_b_ref,
                        out_ref, acc_ref, *, eps, apply_act, short_cut, num_mlp_layers):
    f32 = jnp.float32
    bf16 = jnp.bfloat16
    i = pl.program_id(1)
    e = pl.program_id(2)
    tn = out_ref.shape[0]

    @pl.when(e == 0)
    def _():
        acc_ref[...] = jnp.zeros_like(acc_ref)

    # scatter-add this edge tile's messages into this node tile (0/1 one-hot, bf16 MXU).
    dst_row = dst_ref[...]                                           # (1, te) int32; -1 = padding
    n_glob = i * tn + lax.broadcasted_iota(jnp.int32, (tn, dst_ref.shape[1]), 0)
    scatter = (dst_row == n_glob).astype(bf16)                       # (tn, te) bf16
    acc_ref[...] += jnp.dot(scatter, msg_ref[...], preferred_element_type=f32)

    @pl.when(e == pl.num_programs(2) - 1)
    def _():
        x_tile = x_ref[...]                                          # (tn, H) f32
        out = acc_ref[...] + (1.0 + eps) * x_tile
        # TODO(synk): exact MLP([H]*5, is_res=True) definition not provided; assumed
        # 4 residual Linear+ReLU blocks: h = relu(h @ W_l + b_l) + h.
        for l in range(num_mlp_layers):
            h = jnp.dot(out.astype(bf16), mlp_w_ref[l],
                        preferred_element_type=f32) + mlp_b_ref[l]
            out = jnp.maximum(h, 0.0) + out
        if apply_act:                                # conv_idx < num_convs - 1
            out = jnp.maximum(out, 0.0)
        if short_cut:
            out = out + x_tile
        out_ref[...] = out.astype(out_ref.dtype)


# ----------------------- stage 3: edge-type attention ------------------------
def _edgetype_attn_kernel(x_ref, wqkv_ref, bqkv_ref, wo_ref, bo_ref,
                          hm_ref, hmt_ref, out_ref, *, scale):
    # TODO(synk): Multi_Attn definition not provided; assumed single-layer multi-head
    # self-attention over the 4 edge-type tokens per node, with residual, no dropout (eval).
    f32 = jnp.float32
    bf16 = jnp.bfloat16
    num_tok, tn, hidden = x_ref.shape
    hp = hm_ref.shape[1]

    xm_bf = x_ref[...].reshape(num_tok * tn, hidden)                 # bf16, layout-free reshape
    xm = xm_bf.astype(f32)

    # fused q/k/v projection: one (T*tn, H) @ (H, 3H) MXU matmul
    qkv = jnp.dot(xm_bf, wqkv_ref[...], preferred_element_type=f32) + bqkv_ref[...]
    q = qkv[:, :hidden] * scale
    k = qkv[:, hidden:2 * hidden]
    v = qkv[:, 2 * hidden:]
    k3 = k.reshape(num_tok, tn, hidden)

    hm = hm_ref[...]                       # (H, HP) bf16 head grouping (exact 0/1)
    hmt = hmt_ref[...]                     # (HP, H) bf16

    outs = []
    for ti in range(num_tok):
        qi = q[ti * tn:(ti + 1) * tn, :]                             # (tn, H) f32
        # all key tokens' per-head scores for this query token in one batched matmul
        prod = (k3 * qi[None, :, :]).reshape(num_tok * tn, hidden)   # f32 VPU
        s = jnp.dot(prod.astype(bf16), hm,
                    preferred_element_type=f32).reshape(num_tok, tn, hp)
        m = jnp.max(s, axis=0)                                       # (tn, HP)
        ex = jnp.exp(s - m[None])                                    # (T, tn, HP) f32
        denom = jnp.sum(ex, axis=0)                                  # (tn, HP)
        inv = pl.reciprocal(denom, approx=True)                      # EUP slot
        # expand per-head weights to per-dim with one batched matmul, weight V, then
        # normalize once after the token sum (exact: hm/hmt are 0/1 head masks).
        p_dims = jnp.dot(ex.reshape(num_tok * tn, hp).astype(bf16), hmt,
                         preferred_element_type=f32)                 # (T*tn, H)
        unnorm = jnp.sum((p_dims * v).reshape(num_tok, tn, hidden), axis=0)
        inv_dims = jnp.dot(inv.astype(bf16), hmt, preferred_element_type=f32)
        outs.append(unnorm * inv_dims)

    o_all = jnp.concatenate(outs, axis=0)                            # (T*tn, H)
    y = jnp.dot(o_all.astype(bf16), wo_ref[...], preferred_element_type=f32) + bo_ref[...]
    out_ref[...] = (y + xm).reshape(num_tok, tn, hidden).astype(out_ref.dtype)


# ------------------------ host-side edge-type grouping -----------------------
def _group_edges_by_type(edge_index, edge_attr, edge_mask, tile_e):
    src = np.asarray(edge_index[0], dtype=np.int32)
    dst = np.asarray(edge_index[1], dtype=np.int32)
    ea = np.asarray(edge_attr, dtype=np.float32)
    mask = np.asarray(edge_mask).astype(bool)
    T = mask.shape[0]
    H = ea.shape[1]
    counts = mask.sum(axis=1)
    e_grp = max(int(counts.max()) if counts.size else 0, 1)
    te = min(tile_e, _round_up(e_grp, 128))
    e_pad = _round_up(e_grp, te)
    src_g = np.zeros((T, e_pad, 1), np.int32)
    dst_g = np.full((T, 1, e_pad), -1, np.int32)      # -1 never matches a node row
    ea_g = np.zeros((T, e_pad, H), np.float32)
    for t in range(T):
        idx = np.nonzero(mask[t])[0]
        c = idx.shape[0]
        if c:
            src_g[t, :c, 0] = src[idx]
            dst_g[t, 0, :c] = dst[idx]
            ea_g[t, :c, :] = ea[idx]
    return (jnp.asarray(src_g), jnp.asarray(dst_g),
            jnp.asarray(ea_g, dtype=jnp.bfloat16), te, e_pad)


# -------------------------------- wrapper ------------------------------------
def node_conv_forward(params, node_attr, edge_index, edge_attr, edge_mask,
                      conv_idx, num_convs=3, short_cut=True,
                      *, tile_n=256, tile_e=512):
    f32 = jnp.float32
    bf16 = jnp.bfloat16
    N, T, H = node_attr.shape
    heads = params["head_num"]
    assert H % 128 == 0, "hidden_dim must be a multiple of 128 (lane-dense tiles)"
    assert H % heads == 0
    dh = H // heads
    L = params["mlp_w"].shape[1]

    tn = min(tile_n, _round_up(N, 8))
    assert tn % 8 == 0
    N_pad = _round_up(N, tn)

    # pack each edge type's edges contiguously (replaces the mask-over-all-edges sweep)
    src_g, dst_g, ea_g, te, E_pad = _group_edges_by_type(edge_index, edge_attr,
                                                         edge_mask, tile_e)
    n_etiles = E_pad // te

    # token-major node features, padded along N
    x_all = jnp.transpose(node_attr, (1, 0, 2)).astype(f32)           # (T, N_pad, H) f32
    x_all = jnp.pad(x_all, ((0, 0), (0, N_pad - N), (0, 0)))
    x_all_bf = x_all.astype(bf16)                                     # for the MXU gather

    lin_w = params["lin_w"].astype(bf16)
    lin_b = params["lin_b"].astype(f32)
    mlp_w = params["mlp_w"].astype(bf16)
    mlp_b = params["mlp_b"].astype(f32)

    apply_act = bool(conv_idx < num_convs - 1)
    vmem_limit = _vmem_limit_bytes()

    # ---- stage 1: per-edge messages, hoisted out of the node-tile axis ----
    msg = pl.pallas_call(
        _message_kernel,
        out_shape=jax.ShapeDtypeStruct((T, E_pad, H), bf16),
        grid_spec=pltpu.PrefetchScalarGridSpec(
            num_scalar_prefetch=0,
            grid=(T, n_etiles),
            in_specs=[
                pl.BlockSpec((None, N_pad, H), lambda t, e: (t, 0, 0)),   # x (bf16, full N per type)
                pl.BlockSpec((None, te, H), lambda t, e: (t, e, 0)),      # grouped edge_attr tile
                pl.BlockSpec((None, te, 1), lambda t, e: (t, e, 0)),      # grouped src tile
                pl.BlockSpec((None, H, H), lambda t, e: (t, 0, 0)),       # edge Linear W (bf16)
                pl.BlockSpec((None, 1, H), lambda t, e: (t, 0, 0)),       # edge Linear b
            ],
            out_specs=pl.BlockSpec((None, te, H), lambda t, e: (t, e, 0)),
        ),
        compiler_params=pltpu.CompilerParams(
            dimension_semantics=("parallel", "parallel"),
            vmem_limit_bytes=vmem_limit),
    )(x_all_bf, ea_g, src_g, lin_w, lin_b)

    # ---- stage 2: scatter-add per node tile + GIN residual MLP finalize ----
    gine_kernel = functools.partial(
        _scatter_mlp_kernel, eps=0.0, apply_act=apply_act,
        short_cut=bool(short_cut), num_mlp_layers=int(L))
    hidden_all = pl.pallas_call(
        gine_kernel,
        out_shape=jax.ShapeDtypeStruct((T, N_pad, H), bf16),
        grid_spec=pltpu.PrefetchScalarGridSpec(
            num_scalar_prefetch=0,
            grid=(T, N_pad // tn, n_etiles),
            in_specs=[
                pl.BlockSpec((None, 1, te), lambda t, i, e: (t, 0, e)),       # grouped dst tile
                pl.BlockSpec((None, te, H), lambda t, i, e: (t, e, 0)),       # message tile (bf16)
                pl.BlockSpec((None, tn, H), lambda t, i, e: (t, i, 0)),       # x tile (f32)
                pl.BlockSpec((None, L, H, H), lambda t, i, e: (t, 0, 0, 0)),  # MLP Ws (bf16)
                pl.BlockSpec((None, L, 1, H), lambda t, i, e: (t, 0, 0, 0)),  # MLP bs
            ],
            out_specs=pl.BlockSpec((None, tn, H), lambda t, i, e: (t, i, 0)),
            scratch_shapes=[pltpu.VMEM((tn, H), f32)],
        ),
        compiler_params=pltpu.CompilerParams(
            dimension_semantics=("parallel", "parallel", "arbitrary"),
            vmem_limit_bytes=vmem_limit),
    )(dst_g, msg, x_all, mlp_w, mlp_b)

    # ---- stage 3: edge-type multi-head self-attention over the 4 tokens per node ----
    HP = _round_up(heads, 128)
    head_id = jnp.arange(H) // dh
    hm = (head_id[:, None] == jnp.arange(HP)[None, :]).astype(bf16)   # (H, HP) 0/1
    hmt = jnp.transpose(hm)                                           # (HP, H)

    wqkv = jnp.concatenate([params["wq"], params["wk"], params["wv"]], axis=1).astype(bf16)
    bqkv = jnp.concatenate([params["bq"], params["bk"], params["bv"]], axis=1).astype(f32)
    wo = params["wo"].astype(bf16)
    bo = params["bo"].astype(f32)

    # keep several pipeline steps (and both v7x TCs busy) even at small node counts
    tn_attn = tn
    while N_pad // tn_attn < 8 and tn_attn % 16 == 0 and tn_attn > 8:
        tn_attn //= 2

    attn_kernel = functools.partial(_edgetype_attn_kernel, scale=1.0 / math.sqrt(dh))
    node_vec = pl.pallas_call(
        attn_kernel,
        out_shape=jax.ShapeDtypeStruct((T, N_pad, H), f32),
        grid_spec=pltpu.PrefetchScalarGridSpec(
            num_scalar_prefetch=0,
            grid=(N_pad // tn_attn,),
            in_specs=[
                pl.BlockSpec((T, tn_attn, H), lambda i: (0, i, 0)),   # hidden (bf16)
                pl.BlockSpec((H, 3 * H), lambda i: (0, 0)),           # fused Wqkv (bf16)
                pl.BlockSpec((1, 3 * H), lambda i: (0, 0)),           # fused bqkv
                pl.BlockSpec((H, H), lambda i: (0, 0)),               # Wo (bf16)
                pl.BlockSpec((1, H), lambda i: (0, 0)),               # bo
                pl.BlockSpec((H, HP), lambda i: (0, 0)),              # head mask (bf16)
                pl.BlockSpec((HP, H), lambda i: (0, 0)),              # head mask^T (bf16)
            ],
            out_specs=pl.BlockSpec((T, tn_attn, H), lambda i: (0, i, 0)),
        ),
        compiler_params=pltpu.CompilerParams(
            dimension_semantics=("parallel",),
            vmem_limit_bytes=vmem_limit),
    )(hidden_all, wqkv, bqkv, wo, bo, hm, hmt)

    node_vec = node_vec[:, :N, :]
    return node_vec[0], node_vec[1], node_vec[2], node_vec[3]


# --------------------------- pure-JAX reference ------------------------------
def _reference_forward(params, node_attr, edge_index, edge_attr, edge_mask,
                       conv_idx, num_convs=3, short_cut=True):
    f32 = jnp.float32
    N, T, H = node_attr.shape
    heads = params["head_num"]
    dh = H // heads
    src, dst = edge_index[0], edge_index[1]
    apply_act = conv_idx < num_convs - 1
    L = params["mlp_w"].shape[1]

    hiddens = []
    for t in range(T):
        x = node_attr[:, t, :].astype(f32)
        m = edge_mask[t].astype(f32)[:, None]
        ea = edge_attr.astype(f32) @ params["lin_w"][t] + params["lin_b"][t]
        msg = jnp.maximum(x[src] + ea, 0.0) * m
        agg = jnp.zeros((N, H), f32).at[dst].add(msg)
        out = agg + x                                   # eps = 0
        for l in range(L):
            h = out @ params["mlp_w"][t, l] + params["mlp_b"][t, l]
            out = jnp.maximum(h, 0.0) + out
        if apply_act:
            out = jnp.maximum(out, 0.0)
        if short_cut:
            out = out + x
        hiddens.append(out)
    xh = jnp.stack(hiddens, axis=1)                     # (N, T, H)

    q = xh @ params["wq"] + params["bq"]
    k = xh @ params["wk"] + params["bk"]
    v = xh @ params["wv"] + params["bv"]
    qh = q.reshape(N, T, heads, dh)
    kh = k.reshape(N, T, heads, dh)
    vh = v.reshape(N, T, heads, dh)
    scores = jnp.einsum("nihd,njhd->nhij", qh, kh) / math.sqrt(dh)
    p = jax.nn.softmax(scores, axis=-1)
    oh = jnp.einsum("nhij,njhd->nihd", p, vh).reshape(N, T, H)
    y = oh @ params["wo"] + params["bo"] + xh
    return tuple(y[:, t, :] for t in range(T))


# --------------------------- deterministic params ----------------------------
def init_params(key, hidden_dim, heads=32, num_mlp_layers=4):
    T = 4
    keys = jax.random.split(key, 12)
    H = hidden_dim
    scale = 0.5 / math.sqrt(H)

    def w(k, shape):
        return jax.random.normal(k, shape, dtype=jnp.float32) * scale

    return dict(
        head_num=heads,
        lin_w=w(keys[0], (T, H, H)),                  # GINEConv edge Linear per edge type
        lin_b=w(keys[1], (T, 1, H)),
        mlp_w=w(keys[2], (T, num_mlp_layers, H, H)),  # residual MLP per edge type
        mlp_b=w(keys[3], (T, num_mlp_layers, 1, H)),
        wq=w(keys[4], (H, H)), bq=w(keys[5], (1, H)),
        wk=w(keys[6], (H, H)), bk=w(keys[7], (1, H)),
        wv=w(keys[8], (H, H)), bv=w(keys[9], (1, H)),
        wo=w(keys[10], (H, H)), bo=w(keys[11], (1, H)),
    )


if __name__ == "__main__":
    N, T, H, E = 512, 4, 128, 512     # nodes, edge types, hidden (lane-dense), total edges
    heads = 32
    key = jax.random.PRNGKey(0)
    k1, k2, k3, k4 = jax.random.split(key, 4)

    node_attr = jax.random.normal(k1, (N, T, H), dtype=jnp.float32)     # (num_node, 4, hidden)
    edge_attr = jax.random.normal(k2, (E, H), dtype=jnp.float32)        # (num_edge, hidden)
    src = jax.random.randint(k3, (E,), 0, N, dtype=jnp.int32)
    dst = jax.random.randint(k4, (E,), 0, N, dtype=jnp.int32)
    edge_index = jnp.stack([src, dst], axis=0)                          # (2, num_edge)
    edge_type = jnp.arange(E) // (E // T)
    edge_mask = (edge_type[None, :] == jnp.arange(T)[:, None])          # (4, num_edge) bool

    params = init_params(jax.random.PRNGKey(42), H, heads=heads)

    outs = node_conv_forward(params, node_attr, edge_index, edge_attr, edge_mask,
                             conv_idx=0, num_convs=3, short_cut=True,
                             tile_n=256, tile_e=512)
    outs = jax.block_until_ready(outs)
    assert all(o.shape == (N, H) for o in outs)

    refs = _reference_forward(params, node_attr, edge_index, edge_attr, edge_mask,
                              conv_idx=0, num_convs=3, short_cut=True)
    max_err = 0.0
    for o, r in zip(outs, refs):
        denom = float(jnp.max(jnp.abs(r))) + 1e-6
        max_err = max(max_err, float(jnp.max(jnp.abs(o - r))) / denom)
    # bf16 MXU operands + bf16 intermediate hidden + approx reciprocal: expect ~1e-2 rel err.
    assert max_err < 4e-2, f"mismatch vs reference: rel err {max_err}"
    print("KERNEL_OK")
</pallas_src>

<mosaic_0001>
module attributes {stable_mosaic.version = 11 : i64} {
  func.func @_message_kernel(%arg0: i32, %arg1: i32, %arg2: memref<1x512x128xbf16, #tpu.memory_space<vmem>>, %arg3: memref<1x128x128xbf16, #tpu.memory_space<vmem>>, %arg4: memref<1x128x1xi32, #tpu.memory_space<vmem>>, %arg5: memref<1x128x128xbf16, #tpu.memory_space<vmem>>, %arg6: memref<1x1x128xf32, #tpu.memory_space<vmem>>, %arg7: memref<1x128x128xbf16, #tpu.memory_space<vmem>>) attributes {dimension_semantics = [#tpu.dimension_semantics<parallel>, #tpu.dimension_semantics<parallel>], iteration_bounds = array<i64: 4, 1>, scalar_prefetch = 0 : i64, scratch_operands = 0 : i64, tpu.core_type = #tpu.core_type<tc>, window_params = [{transform_indices = @transform_0, window_bounds = array<i64: 1, 512, 128>}, {transform_indices = @transform_1, window_bounds = array<i64: 1, 128, 128>}, {transform_indices = @transform_2, window_bounds = array<i64: 1, 128, 1>}, {transform_indices = @transform_3, window_bounds = array<i64: 1, 128, 128>}, {transform_indices = @transform_4, window_bounds = array<i64: 1, 1, 128>}, {transform_indices = @transform_5, window_bounds = array<i64: 1, 128, 128>}]} {
    %c0 = arith.constant 0 : index
    %c0_0 = arith.constant 0 : index
    %c0_1 = arith.constant 0 : index
    %0 = vector.load %arg4[%c0, %c0_0, %c0_1] : memref<1x128x1xi32, #tpu.memory_space<vmem>>, vector<1x128x1xi32>
    %1 = vector.shape_cast %0 : vector<1x128x1xi32> to vector<128x1xi32>
    %2 = tpu.iota {dimensions = array<i32: 1>} : vector<128x512xi32>
    %3 = vector.broadcast %1 : vector<128x1xi32> to vector<128x512xi32>
    %4 = arith.cmpi eq, %2, %3 : vector<128x512xi32>
    %5 = arith.extui %4 : vector<128x512xi1> to vector<128x512xi32>
    %6 = arith.sitofp %5 : vector<128x512xi32> to vector<128x512xf32>
    %7 = arith.truncf %6 : vector<128x512xf32> to vector<128x512xbf16>
    %c0_2 = arith.constant 0 : index
    %c0_3 = arith.constant 0 : index
    %c0_4 = arith.constant 0 : index
    %8 = vector.load %arg2[%c0_2, %c0_3, %c0_4] : memref<1x512x128xbf16, #tpu.memory_space<vmem>>, vector<1x512x128xbf16>
    %9 = vector.shape_cast %8 : vector<1x512x128xbf16> to vector<512x128xbf16>
    %cst = arith.constant dense<0.000000e+00> : vector<128x128xf32>
    %10 = tpu.matmul %7, %9, %cst {dimension_numbers = #tpu.dot_dimension_numbers<[1], [0], [0], [1], [0, 0, 1, 1], [], []>} : vector<128x512xbf16>, vector<512x128xbf16>, vector<128x128xf32> -> vector<128x128xf32>
    %c0_5 = arith.constant 0 : index
    %c0_6 = arith.constant 0 : index
    %c0_7 = arith.constant 0 : index
    %11 = vector.load %arg3[%c0_5, %c0_6, %c0_7] : memref<1x128x128xbf16, #tpu.memory_space<vmem>>, vector<1x128x128xbf16>
    %12 = vector.shape_cast %11 : vector<1x128x128xbf16> to vector<128x128xbf16>
    %c0_8 = arith.constant 0 : index
    %c0_9 = arith.constant 0 : index
    %c0_10 = arith.constant 0 : index
    %13 = vector.load %arg5[%c0_8, %c0_9, %c0_10] : memref<1x128x128xbf16, #tpu.memory_space<vmem>>, vector<1x128x128xbf16>
    %14 = vector.shape_cast %13 : vector<1x128x128xbf16> to vector<128x128xbf16>
    %cst_11 = arith.constant dense<0.000000e+00> : vector<128x128xf32>
    %15 = tpu.matmul %12, %14, %cst_11 {dimension_numbers = #tpu.dot_dimension_numbers<[1], [0], [0], [1], [0, 0, 1, 1], [], []>} : vector<128x128xbf16>, vector<128x128xbf16>, vector<128x128xf32> -> vector<128x128xf32>
    %c0_12 = arith.constant 0 : index
    %c0_13 = arith.constant 0 : index
    %c0_14 = arith.constant 0 : index
    %16 = vector.load %arg6[%c0_12, %c0_13, %c0_14] : memref<1x1x128xf32, #tpu.memory_space<vmem>>, vector<1x1x128xf32>
    %17 = vector.shape_cast %16 : vector<1x1x128xf32> to vector<1x128xf32>
    %18 = vector.broadcast %17 : vector<1x128xf32> to vector<128x128xf32>
    %19 = arith.addf %15, %18 : vector<128x128xf32>
    %20 = arith.addf %10, %19 : vector<128x128xf32>
    %cst_15 = arith.constant 0.000000e+00 : f32
    %21 = vector.broadcast %cst_15 : f32 to vector<128x128xf32>
    %22 = arith.maximumf %20, %21 : vector<128x128xf32>
    %23 = arith.truncf %22 : vector<128x128xf32> to vector<128x128xbf16>
    %c0_16 = arith.constant 0 : index
    %c0_17 = arith.constant 0 : index
    %c0_18 = arith.constant 0 : index
    %24 = vector.load %arg7[%c0_16, %c0_17, %c0_18] : memref<1x128x128xbf16, #tpu.memory_space<vmem>>, vector<1x128x128xbf16>
    %25 = vector.shape_cast %24 : vector<1x128x128xbf16> to vector<128x128xbf16>
    %26 = vector.shape_cast %23 : vector<128x128xbf16> to vector<1x128x128xbf16>
    tpu.vector_store %arg7[%c0_16, %c0_17, %c0_18], %26 {strides = array<i32>} : memref<1x128x128xbf16, #tpu.memory_space<vmem>>, vector<1x128x128xbf16>,
    return
  }
  func.func @transform_0(%arg0: i32, %arg1: i32) -> (i32, i32, i32) {
    %c0_i32 = arith.constant 0 : i32
    %c0_i32_0 = arith.constant 0 : i32
    %c0_i32_1 = arith.constant 0 : i32
    return %arg0, %c0_i32, %c0_i32_0 : i32, i32, i32
  }
  func.func @transform_1(%arg0: i32, %arg1: i32) -> (i32, i32, i32) {
    %c0_i32 = arith.constant 0 : i32
    %c0_i32_0 = arith.constant 0 : i32
    return %arg0, %arg1, %c0_i32 : i32, i32, i32
  }
  func.func @transform_2(%arg0: i32, %arg1: i32) -> (i32, i32, i32) {
    %c0_i32 = arith.constant 0 : i32
    %c0_i32_0 = arith.constant 0 : i32
    return %arg0, %arg1, %c0_i32 : i32, i32, i32
  }
  func.func @transform_3(%arg0: i32, %arg1: i32) -> (i32, i32, i32) {
    %c0_i32 = arith.constant 0 : i32
    %c0_i32_0 = arith.constant 0 : i32
    %c0_i32_1 = arith.constant 0 : i32
    return %arg0, %c0_i32, %c0_i32_0 : i32, i32, i32
  }
  func.func @transform_4(%arg0: i32, %arg1: i32) -> (i32, i32, i32) {
    %c0_i32 = arith.constant 0 : i32
    %c0_i32_0 = arith.constant 0 : i32
    %c0_i32_1 = arith.constant 0 : i32
    return %arg0, %c0_i32, %c0_i32_0 : i32, i32, i32
  }
  func.func @transform_5(%arg0: i32, %arg1: i32) -> (i32, i32, i32) {
    %c0_i32 = arith.constant 0 : i32
    %c0_i32_0 = arith.constant 0 : i32
    return %arg0, %arg1, %c0_i32 : i32, i32, i32
  }
}

</mosaic_0001>

<bundles_post_ra>
// kernel: tpu_custom_call.1
= control target key start
LH: loop header
LB: loop body
LE: loop exit
PB: predicated region body
PF: predicated region fallthrough
CT: control target
= control target key end

     0   :  { %10 = vsyncpa [#allocation3], 0  ;;  %s2804_s0 = inlined_call_operand.hbm [shape: bf16[4,512,128], index: 0, kind: input, shape index: {}]   ;;  %s2805_s1 = inlined_call_operand.vmem [shape: bf16[4,128,128], index: 1, kind: input, shape index: {}]   ;;  %s2806_s2 = inlined_call_operand.vmem [shape: s32[4,128,1], index: 2, kind: input, shape index: {}]   ;;  %s2807_s3 = inlined_call_operand.vmem [shape: bf16[4,128,128], index: 3, kind: input, shape index: {}]   ;;  %s2808_s4 = inlined_call_operand.vmem [shape: f32[4,1,128], index: 4, kind: input, shape index: {}]   ;;  %s2809_s5 = inlined_call_operand.hbm [shape: bf16[4,128,128], index: 5, kind: output, shape index: {}]  }
   0x1   :  { %12 = vsyncpa [#allocation3 + $0x1], 0 }
   0x2   :  { %13 = vsyncpa [#allocation4], 0 }
   0x3   :  { %15 = vsyncpa [#allocation4 + $0x1], 0  ;;  %s2333_s18 = smov 0   ;;  %s2335_s19 = smov 0  }
   0x4   :  { %s2337_s20 = smov 0   ;;  %s2339_s21 = smov 0  }
   0x5   :  { %s2341_s22 = smov 0   ;;  %s2343_s23 = smov 0  }
   0x6 LB: > { %s1593_s24 = sadd.s32 4294967295, %s2293_s23   ;;  %s1594_s25 = sadd.s32 4294967294, %s2293_s23   ;;  %s2293_s23 = sphi %s2343_s23, %s21_s23   ;;  %s2289_s22 = sphi %s2341_s22, %s2821_s22   ;;  %s2285_s21 = sphi %s2339_s21, %s2820_s21   ;;  %s2281_s20 = sphi %s2337_s20, %s2819_s20   ;;  %s2277_s19 = sphi %s2335_s19, %s2818_s19   ;;  %s2273_s18 = sphi %s2333_s18, %s2817_s18  }
   0x7   : > { %s33_s26 = sadd.s32 1, %s2289_s22  ;;  %s40_s27 = sadd.s32 1, %s2281_s20 }
   0x8   : > { %p35_p0 = scmp.ge.s32.totalorder %s33_s26, 4  ;;  %p47_p1 = scmp.ne.s32.totalorder %s2281_s20, %s2277_s19 }
   0x9   : > { %p48_p2 = scmp.eq.s32.totalorder %s2293_s23, 0  ;;  %p53_p3 = scmp.ne.s32.totalorder %s2277_s19, %s2273_s18 }
   0xa   : > { %s2823_s26 = smov (%p35_p0, %s33_s26), 0  ;;  %p54_p5 = scmp.eq.s32.totalorder %s1593_s24, 0 }
   0xb   : > { %p2374_p4 = por %p48_p2, %p47_p1  ;;  %s37_s29 = ssub.s32 %s2289_s22, %s2823_s26 }
   0xc   : > { %p187_p6 = scmp.eq.s32.totalorder %s1593_s24, 3  ;;  %p38_p7 = scmp.eq.s32.totalorder %s37_s29, 0 }
   0xd   : > { %p2380_p8 = por %p54_p5, %p53_p3  ;;  %p193_p10 = scmp.eq.s32.totalorder %s1594_s25, 3 }
   0xe   : > { %p2384_p9 = por %p187_p6, %p47_p1  ;;  %p2079_p12 = scmp.lt.s32.totalorder %s2293_s23, 4 }
   0xf   : > { %s2389_s7 = scalar_select %p38_p7, %s2281_s20, %s40_s27  }
  0x10   : > { %p2391_p11 = por %p193_p10, %p53_p3  ;;  %s213_s9 = sand.u32 1, %s2281_s20  }
  0x11   : > { %s1597_s10 = sshll.u32 %s213_s9, 8  ;;  %s1807_s11 = sshll.u32 %s2289_s22, 12 }
  0x12   : > { %s223_s14 = scalar_lea.hbm %s2804_s0, %s1807_s11  ;;  %s217_s15 = scalar_lea.vmem [#allocation2], %s1597_s10 }
  0x13   : > { %s224_s16 = sshll.u32 %s217_s15, 4  ;;  %p2403_p13 = pnand %p2079_p12, %p2374_p4  ;;  %s225_s16 = int_to_ptr.vmem [resolvable:$true] %s224_s16 }
  0x14   : > { %p1600_p0 = scmp.ge.s32.totalorder %s2293_s23, 1  ;;  %s214_s24 = scalar_lea.sflag [#allocation3], %s213_s9 }
  0x15   : > { %p2187_p1 = pneg %p2403_p13  ;;  %s2198_s25 = scalar_lea.vmem %s225_s16, 4096 }
  0x16   : > { %p2199_p2 = scmp.ne.s32.totalorder %s225_s16, %s2198_s25  ;;  %s2295_s27 = smov [#allocation2]  }
  0x17   : > { %s2203_s29 = sshll.u32 %s2295_s27, 4  ;;  %s2204_s29 = int_to_ptr.vmem [resolvable:$false] %s2203_s29 }
  0x18   : > { %p2201_p3 = pnand %p2199_p2, %p2187_p1  ;;  %s2205_s10 = scalar_lea.vmem %s2204_s29, 8192 }
  0x19   : > { %p2206_p6 = scmp.lt.s32.totalorder %s225_s16, %s2204_s29  ;;  %p2207_p7 = scmp.lt.s32.totalorder %s2205_s10, %s2198_s25 }
  0x1a   : > { %p2202_p5 = pneg %p2201_p3 }
  0x1b   : > { %p2208_p10 = por %p2207_p7, %p2206_p6 }
  0x1d   : > { %p2209_p4 = pnand %p2208_p10, %p2202_p5 }
  0x1f   : > { %2212 = shalt.err (!%p2209_p4)
}
  0x20   : > { %s2296_s28 = smov 64   ;;  %s2297_s9 = smov 4  }
  0x21   : > { %2074 = dma.hbm_to_vmem [thread:$0]  (!%p2403_p13), %s223_s14, 4096, %s225_s16, %s214_s24, %s2296_s28, %s2296_s28, %s2297_s9  }
  0x22   : > { %p272_p12 = scmp.lt.s32.totalorder %s2293_s23, 5 }
  0x24   : > { %p273_p1 = pnand %p1600_p0, %p272_p12 }
  0x25   : > { %s2416_s11 = sand.u32 (!%p273_p1), 1, %s2277_s19  }
  0x26   : > { %276 = sbr.rel (%p273_p1) target bundleno = 477 (0x1dd), region = 40  ;;  %s1601_s12 = sshll.u32 (!%p273_p1), %s2416_s11, 8 }
  0x27   : > { %s279_s13 = scalar_lea.sflag (!%p273_p1), [#allocation3], %s2416_s11  ;;  %s2420_s15 = scalar_lea.vmem (!%p273_p1), [#allocation2], %s1601_s12 }
  0x2b   : > { %2264 = dma.done.wait (%p2380_p8), %s279_s13, 4096  }
  0x2c   : > { %2266 = vsyncadd (%p2380_p8), %s279_s13, 4294963200  ;;  %p336_p13 = scmp.lt.s32.totalorder %s2285_s21, 3  ;;  %v2298_v0 = vmov 0   ;;  %v2146_v16 = vld [vmem:[%s2420_s15 + $0x78] sm:$0xff]   ;;  %v2151_v22 = vld [vmem:[%s2420_s15 + $0x70] sm:$0xff]   ;;  %s1827_s24 = sshll.u32 %s2285_s21, 10 }
  0x2d   : > { %2136 = vset.pattern.permute.xlu1 %v2298_v0  ;;  %2135 = vset.pattern.permute.xlu0 %v2298_v0  ;;  %v2148_v18 = vld [vmem:[%s2420_s15 + $0x38] sm:$0xff]   ;;  %v2152_v23 = vld [vmem:[%s2420_s15 + $0x30] sm:$0xff]   ;;  %v2156_v28 = vld [vmem:[%s2420_s15 + $0x68] sm:$0xff]   ;;  %s2754_s29 = scalar_lea.hbm %s2809_s5, %s1827_s24 }
  0x2e   : > { %s2428_s14 = scalar_select %p336_p13, %s2285_s21, 3  ;;  %1891 = vmatprep.subr.bf16.mxu1 %v2146_v16  ;;  %v2158_v30 = vld [vmem:[%s2420_s15 + $0x28] sm:$0xff]   ;;  %v2161_v32 = vld [vmem:[%s2420_s15 + $0x60] sm:$0xff]   ;;  %v2149_v34 = vld [vmem:[%s2420_s15 + $0xf8] sm:$0xff]  }
  0x2f   : > { %1892 = vmatpush3.bf16.msra.mxu1 %v2148_v18  ;;  %v2162_v33 = vld [vmem:[%s2420_s15 + $0x20] sm:$0xff]   ;;  %v2166_v36 = vld [vmem:[%s2420_s15 + $0x58] sm:$0xff]   ;;  %v2489_v40 = vld [vmem:[%s2420_s15 + $0xf0] sm:$0xff]   ;;  %s2300_s21 = smov [#allocation5]  }
  0x30   : > { %s1809_s16 = sshll.u32 %s2428_s14, 7  ;;  %s1808_s30 = sshll.u32 %s2428_s14, 6  ;;  %1893 = vmatprep.subr.bf16.mxu1 %v2151_v22  ;;  %v2484_v37 = vld [vmem:[%s2420_s15 + $0xb8] sm:$0xff]   ;;  %v2171_v41 = vld [vmem:[%s2420_s15 + $0x50] sm:$0xff]   ;;  %v2500_v45 = vld [vmem:[%s2420_s15 + $0xe8] sm:$0xff]  }
  0x31   : > { %s2434_s25 = scalar_lea.vmem %s2806_s2, %s1809_s16  ;;  %s2444_s10 = scalar_lea.vmem %s2807_s3, %s1808_s30  ;;  %v2168_v38 = vld [vmem:[%s2420_s15 + $0x18] sm:$0xff]   ;;  %v2172_v42 = vld [vmem:[%s2420_s15 + $0x10] sm:$0xff]   ;;  %v2503_v46 = vld [vmem:[%s2420_s15 + $0xa8] sm:$0xff]  }
  0x32   : > { %v367_v1 = vld [vmem:[%s2434_s25 + $0x10] sm:$0xff]  ;;  %v365_v2 = vld [vmem:[%s2434_s25] sm:$0xff]  ;;  %v368_v3 = vld [vmem:[%s2434_s25 + $0x18] sm:$0xff]  ;;  %s2456_s12 = scalar_lea.vmem %s2805_s1, %s1808_s30  ;;  %s362_s16 = scalar_lea.vmem %s2808_s4, %s2428_s14 }
  0x33   : > { %393 = vperm.xlu1 %2136, %v367_v1   ;;  %387 = vperm.xlu0 %2135, %v365_v2   ;;  %v366_v4 = vld [vmem:[%s2434_s25 + $0x8] sm:$0xff]  ;;  %v369_v6 = vld [vmem:[%s2434_s25 + $0x20] sm:$0xff]  ;;  %v2137_v7 = vld [vmem:[%s2444_s10 + $0x38] sm:$0xff]   ;;  %v381_v1 = vlaneseq  ;;  %s1602_s14 = sshll.u32 %s2416_s11, 6  ;;  %s2217_s9 = sshll.u32 %s2300_s21, 4  ;;  %s2218_s9 = int_to_ptr.vmem [resolvable:$false] %s2217_s9 }
  0x34   : > { %v370_v5 = vld [vmem:[%s2434_s25 + $0x28] sm:$0xff]  ;;  %v2138_v8 = vld [vmem:[%s2444_s10 + $0x30] sm:$0xff]   ;;  %2019 = vmatprep.subr.bf16.mxu0 %v2137_v7  ;;  %v372_v9 = vld [vmem:[%s2434_s25 + $0x38] sm:$0xff]  ;;  %1894 = vmatpush3.bf16.msra.mxu1 %v2152_v23  ;;  %s2719_s17 = scalar_lea.vmem [#allocation5], %s1602_s14 }
  0x35   : > { %v371_v10 = vld [vmem:[%s2434_s25 + $0x30] sm:$0xff]  ;;  %2020 = vmatpush3.bf16.msra.mxu0 %v2137_v7  ;;  %v2139_v11 = vld [vmem:[%s2444_s10 + $0x28] sm:$0xff]   ;;  %v373_v13 = vld [vmem:[%s2434_s25 + $0x40] sm:$0xff]  ;;  %1895 = vmatprep.subr.bf16.mxu1 %v2156_v28  ;;  %v2556_v2 = vand.u32 127, %v381_v1 }
  0x36   : > { %2021 = vmatprep.subr.bf16.mxu0 %v2138_v8  ;;  %v374_v12 = vld [vmem:[%s2434_s25 + $0x48] sm:$0xff]  ;;  %v2140_v14 = vld [vmem:[%s2444_s10 + $0x20] sm:$0xff]   ;;  %v376_v17 = vld [vmem:[%s2434_s25 + $0x58] sm:$0xff] }
  0x37   : > { %396 = vperm.xlu1 %2136, %v368_v3   ;;  %390 = vperm.xlu0 %2135, %v366_v4   ;;  %v2145_v15 = vld [vmem:[%s2456_s12] sm:$0xff]   ;;  %v375_v19 = vld [vmem:[%s2434_s25 + $0x50] sm:$0xff]  ;;  %v2141_v20 = vld [vmem:[%s2444_s10 + $0x18] sm:$0xff]   ;;  %v2565_v7 = vadd.s32 384, %v2556_v2 }
  0x38   : > { %2035 = vmatprep.mubr.bf16.mxu0 %v2145_v15  ;;  %v378_v21 = vld [vmem:[%s2434_s25 + $0x68] sm:$0xff]  ;;  %v377_v24 = vld [vmem:[%s2434_s25 + $0x60] sm:$0xff]  ;;  %v2142_v25 = vld [vmem:[%s2444_s10 + $0x10] sm:$0xff]   ;;  %1896 = vmatpush3.bf16.msra.mxu1 %v2158_v30 }
  0x39   : > { %2022 = vmatpush3.bf16.msra.mxu0 %v2138_v8  ;;  %v380_v26 = vld [vmem:[%s2434_s25 + $0x78] sm:$0xff]  ;;  %v379_v27 = vld [vmem:[%s2434_s25 + $0x70] sm:$0xff]  ;;  %v2143_v29 = vld [vmem:[%s2444_s10 + $0x8] sm:$0xff]   ;;  %1897 = vmatprep.subr.bf16.mxu1 %v2161_v32  ;;  %s1452_s25 = sshll.u32 %s2719_s17, 4  ;;  %s2756_s25 = int_to_ptr.vmem [resolvable:$true] %s1452_s25 }
  0x3a   : > { %2023 = vmatprep.subr.bf16.mxu0 %v2139_v11  ;;  %v2144_v31 = vld [vmem:[%s2444_s10] sm:$0xff]   ;;  %v2147_v35 = vld [vmem:[%s2456_s12 + $0x8] sm:$0xff]   ;;  %v2155_v39 = vld [vmem:[%s2456_s12 + $0x10] sm:$0xff]   ;;  %s1437_s10 = scalar_lea.sflag [#allocation4], %s2416_s11  ;;  %s2213_s28 = scalar_lea.vmem %s2756_s25, 1024 }
  0x3b   : > { %402 = vperm.xlu1 %2136, %v370_v5   ;;  %399 = vperm.xlu0 %2135, %v369_v6   ;;  %v2495_v43 = vld [vmem:[%s2420_s15 + $0xb0] sm:$0xff]   ;;  %v2157_v44 = vld [vmem:[%s2456_s12 + $0x18] sm:$0xff]   ;;  %v2506_v47 = vld [vmem:[%s2420_s15 + $0xe0] sm:$0xff]   ;;  %v2559_v5 = vadd.s32 256, %v2556_v2  ;;  %v2562_v6 = vadd.s32 128, %v2556_v2  ;;  %p2214_p8 = scmp.ne.s32.totalorder %s2756_s25, %s2213_s28  ;;  %p2220_p3 = scmp.lt.s32.totalorder %s2756_s25, %s2218_s9 }
  0x3c   : > { %1898 = vmatpush3.bf16.msra.mxu1 %v2162_v33  ;;  %v2176_v48 = vld [vmem:[%s2420_s15 + $0x48] sm:$0xff]   ;;  %v2165_v49 = vld [vmem:[%s2456_s12 + $0x20] sm:$0xff]   ;;  %v2517_v52 = vld [vmem:[%s2420_s15 + $0xd8] sm:$0xff]  }
  0x3d   : > { %2024 = vmatpush3.bf16.msra.mxu0 %v2139_v11  ;;  %1899 = vmatprep.subr.bf16.mxu1 %v2166_v36  ;;  %v2178_v50 = vld [vmem:[%s2420_s15 + $0x8] sm:$0xff]   ;;  %v2514_v51 = vld [vmem:[%s2420_s15 + $0xa0] sm:$0xff]   ;;  %v2526_v56 = vld [vmem:[%s2420_s15 + $0x98] sm:$0xff]   ;;  %v2299_v11 = vmov 1.0|1.0   ;;  %p2215_p0 = pnand %p2214_p8, %p2384_p9 }
  0x3e   : > { %2025 = vmatprep.subr.bf16.mxu0 %v2140_v14  ;;  %v2181_v53 = vld [vmem:[%s2420_s15 + $0x40] sm:$0xff]   ;;  %v2167_v55 = vld [vmem:[%s2456_s12 + $0x28] sm:$0xff]   ;;  %v2175_v57 = vld [vmem:[%s2456_s12 + $0x30] sm:$0xff]  }
  0x3f   : > { %408 = vperm.xlu1 %2136, %v372_v9   ;;  %405 = vperm.xlu0 %2135, %v371_v10   ;;  %v2182_v54 = vld [vmem:[%s2420_s15] sm:$0xff]   ;;  %v2531_v58 = vld [vmem:[%s2420_s15 + $0xd0] sm:$0xff]   ;;  %v2539_v60 = vld [vmem:[%s2420_s15 + $0xc8] sm:$0xff]   ;;  %p2216_p2 = pneg %p2215_p0 }
  0x40   : > { %1900 = vmatpush3.bf16.msra.mxu1 %v2168_v38  ;;  %v2535_v59 = vld [vmem:[%s2420_s15 + $0x90] sm:$0xff]   ;;  %v2177_v61 = vld [vmem:[%s2456_s12 + $0x38] sm:$0xff]   ;;  %v2544_v62 = vld [vmem:[%s2420_s15 + $0x88] sm:$0xff]   ;;  %s2219_s12 = scalar_lea.vmem %s2218_s9, 2048 }
  0x41   : > { %2026 = vmatpush3.bf16.msra.mxu0 %v2140_v14  ;;  %1901 = vmatprep.subr.bf16.mxu1 %v2171_v41  ;;  %v2548_v63 = vld [vmem:[%s2420_s15 + $0xc0] sm:$0xff]   ;;  %p2221_p5 = scmp.lt.s32.totalorder %s2219_s12, %s2213_s28 }
  0x42   : > { %2027 = vmatprep.subr.bf16.mxu0 %v2141_v20  ;;  %v2552_v0 = vld [vmem:[%s2420_s15 + $0x80] sm:$0xff]  }
  0x43   : > { %414 = vperm.xlu1 %2136, %v374_v12   ;;  %411 = vperm.xlu0 %2135, %v373_v13   ;;  %v2702_v36 = vld [vmem:[%s362_s16] ss:$0 sm:$0xff]  ;;  %p2222_p6 = por %p2221_p5, %p2220_p3 }
  0x44   : > { %1902 = vmatpush3.bf16.msra.mxu1 %v2172_v42 }
  0x45   : > { %2028 = vmatpush3.bf16.msra.mxu0 %v2141_v20  ;;  %1903 = vmatprep.subr.bf16.mxu1 %v2176_v48  ;;  %p2223_p7 = pnand %p2222_p6, %p2216_p2 }
  0x46   : > { %2029 = vmatprep.subr.bf16.mxu0 %v2142_v25 }
  0x47   : > { %420 = vperm.xlu1 %2136, %v376_v17   ;;  %417 = vperm.xlu0 %2135, %v375_v19  }
  0x48   : > { %1904 = vmatpush3.bf16.msra.mxu1 %v2178_v50 }
  0x49   : > { %2030 = vmatpush3.bf16.msra.mxu0 %v2142_v25  ;;  %1905 = vmatprep.subr.bf16.mxu1 %v2181_v53 }
  0x4a   : > { %2031 = vmatprep.subr.bf16.mxu0 %v2143_v29 }
  0x4b   : > { %426 = vperm.xlu1 %2136, %v378_v21   ;;  %423 = vperm.xlu0 %2135, %v377_v24  }
  0x4c   : > { %1906 = vmatpush3.bf16.msra.mxu1 %v2182_v54 }
  0x4d   : > { %2032 = vmatpush3.bf16.msra.mxu0 %v2143_v29  ;;  %2051 = vmatprep.subr.bf16.mxu1 %v2149_v34 }
  0x4e   : > { %2033 = vmatprep.subr.bf16.mxu0 %v2144_v31 }
  0x4f   : > { %432 = vperm.xlu1 %2136, %v380_v26   ;;  %429 = vperm.xlu0 %2135, %v379_v27  }
  0x51   : > { %2034 = vmatpush3.bf16.msra.mxu0 %v2144_v31 }
  0x52   : > { %1955 = vmatprep.subr.bf16.mxu0 %v2149_v34 }
  0x54   : > { %2036 = vmatmul.mubr.bf16.vlgmr.msra.gmra.mxu0 %v2147_v35 }
  0x55   : > { %1956 = vmatpush3.bf16.msra.mxu0 %v2484_v37  ;;  %2039 = vmatprep.mubr.bf16.mxu0 %v2155_v39 }
  0x56   : > { %1957 = vmatprep.subr.bf16.mxu0 %v2489_v40 }
  0x59   : > { %1958 = vmatpush3.bf16.msra.mxu0 %v2495_v43 }
  0x5a   : > { %1959 = vmatprep.subr.bf16.mxu0 %v2500_v45 }
  0x5c   : > { %2040 = vmatmul.mubr.bf16.gmra.mxu0 %v2157_v44 }
  0x5d   : > { %1960 = vmatpush3.bf16.msra.mxu0 %v2503_v46  ;;  %2043 = vmatprep.mubr.bf16.mxu0 %v2165_v49 }
  0x5e   : > { %1961 = vmatprep.subr.bf16.mxu0 %v2506_v47 }
  0x61   : > { %1962 = vmatpush3.bf16.msra.mxu0 %v2514_v51 }
  0x62   : > { %1963 = vmatprep.subr.bf16.mxu0 %v2517_v52 }
  0x64   : > { %2044 = vmatmul.mubr.bf16.gmra.mxu0 %v2167_v55 }
  0x65   : > { %1964 = vmatpush3.bf16.msra.mxu0 %v2526_v56  ;;  %2047 = vmatprep.mubr.bf16.mxu0 %v2175_v57 }
  0x66   : > { %1965 = vmatprep.subr.bf16.mxu0 %v2531_v58 }
  0x69   : > { %1966 = vmatpush3.bf16.msra.mxu0 %v2535_v59 }
  0x6a   : > { %1967 = vmatprep.subr.bf16.mxu0 %v2539_v60 }
  0x6c   : > { %2048 = vmatmul.mubr.bf16.gmra.mxu0 %v2177_v61 }
  0x6d   : > { %1968 = vmatpush3.bf16.msra.mxu0 %v2544_v62 }
  0x6e   : > { %1969 = vmatprep.subr.bf16.mxu0 %v2548_v63 }
  0x71   : > { %1970 = vmatpush3.bf16.msra.mxu0 %v2552_v0 }
  0xae   : > { %v394_v3 = vpop.permute.xlu1 %393  ;;  %v388_v4 = vpop.permute.xlu0 %387 }
  0xaf   : > { %vm436_vm0 = vcmp.eq.s32.totalorder %v2559_v5, %v388_v4  ;;  %vm435_vm5 = vcmp.eq.s32.totalorder %v2562_v6, %v388_v4  ;;  %vm437_vm8 = vcmp.eq.s32.totalorder %v2565_v7, %v388_v4  ;;  %vm443_vm9 = vcmp.eq.s32.totalorder %v2562_v6, %v394_v3 }
  0xb0   : > { %vm434_vm12 = vcmp.eq.s32.totalorder %v2556_v2, %v388_v4  ;;  %vm445_vm13 = vcmp.eq.s32.totalorder %v2565_v7, %v394_v3 }
  0xb2   : > { %v391_v8 = vpop.permute.xlu0 %390  ;;  %v397_v9 = vpop.permute.xlu1 %396 }
  0xb3   : > { %vm440_vm1 = vcmp.eq.s32.totalorder %v2559_v5, %v391_v8  ;;  %vm439_vm2 = vcmp.eq.s32.totalorder %v2562_v6, %v391_v8  ;;  %vm441_vm3 = vcmp.eq.s32.totalorder %v2565_v7, %v391_v8  ;;  %vm438_vm6 = vcmp.eq.s32.totalorder %v2556_v2, %v391_v8 }
  0xb4   : > { %vm2571_vm4 = vmpackc.low %vm440_vm1, %vm436_vm0  ;;  %vm447_vm10 = vcmp.eq.s32.totalorder %v2562_v6, %v397_v9  ;;  %vm449_vm14 = vcmp.eq.s32.totalorder %v2565_v7, %v397_v9 }
  0xb5   : > { %vm1722_vm7 = vmpackc.low %vm439_vm2, %vm435_vm5  ;;  %vm442_vm2 = vcmp.eq.s32.totalorder %v2556_v2, %v394_v3  ;;  %vm444_vm5 = vcmp.eq.s32.totalorder %v2559_v5, %v394_v3 }
  0xb6   : > { %1723 = vmatprep.mubr.msk.bf16.mxu1 %vm1722_vm7, %v2299_v11  ;;  %vm1754_vm11 = vmpackc.low %vm441_vm3, %vm437_vm8  ;;  %v403_v12 = vpop.permute.xlu1 %402  ;;  %v400_v13 = vpop.permute.xlu0 %399  ;;  %vm446_vm3 = vcmp.eq.s32.totalorder %v2556_v2, %v397_v9 }
  0xb7   : > { %1755 = vmatprep.mubr.msk.bf16.mxu0 %vm1754_vm11, %v2299_v11  ;;  %vm1724_vm15 = vmpackc.low %vm438_vm6, %vm434_vm12  ;;  %vm451_vm6 = vcmp.eq.s32.totalorder %v2562_v6, %v400_v13  ;;  %vm455_vm7 = vcmp.eq.s32.totalorder %v2562_v6, %v403_v12 }
  0xb8   : > { %1725 = vmatmul.mubr.msk.bf16.vlgmr.msra.gmra.mxu1 %vm1724_vm15, %v2299_v11  ;;  %1757 = vmatmul.mubr.msk.bf16.vlgmr.msra.gmra.mxu0 %vm2571_vm4, %v2299_v11  ;;  %vm1726_vm0 = vmpackc.low %vm447_vm10, %vm443_vm9  ;;  %vm448_vm4 = vcmp.eq.s32.totalorder %v2559_v5, %v397_v9  ;;  %vm453_vm9 = vcmp.eq.s32.totalorder %v2565_v7, %v400_v13  ;;  %vm457_vm10 = vcmp.eq.s32.totalorder %v2565_v7, %v403_v12 }
  0xb9   : > { %2059 = vmatpush3.bf16.msra.mxu1 %v2484_v37  ;;  %1727 = vmatprep.mubr.msk.bf16.mxu1 %vm1726_vm0, %v2299_v11  ;;  %vm1758_vm1 = vmpackc.low %vm449_vm14, %vm445_vm13  ;;  %vm450_vm14 = vcmp.eq.s32.totalorder %v2556_v2, %v400_v13  ;;  %vm454_vm15 = vcmp.eq.s32.totalorder %v2556_v2, %v403_v12  ;;  %vm452_vm0 = vcmp.eq.s32.totalorder %v2559_v5, %v400_v13 }
  0xba   : > { %1759 = vmatprep.mubr.msk.bf16.mxu0 %vm1758_vm1, %v2299_v11  ;;  %2052 = vmatprep.subr.bf16.mxu1 %v2489_v40  ;;  %vm1728_vm8 = vmpackc.low %vm446_vm3, %vm442_vm2  ;;  %v409_v14 = vpop.permute.xlu1 %408  ;;  %v406_v15 = vpop.permute.xlu0 %405  ;;  %vm456_vm1 = vcmp.eq.s32.totalorder %v2559_v5, %v403_v12 }
  0xbb   : > { %vm1760_vm11 = vmpackc.low %vm448_vm4, %vm444_vm5  ;;  %vm459_vm2 = vcmp.eq.s32.totalorder %v2562_v6, %v406_v15  ;;  %vm463_vm3 = vcmp.eq.s32.totalorder %v2562_v6, %v409_v14  ;;  %vm461_vm4 = vcmp.eq.s32.totalorder %v2565_v7, %v406_v15 }
  0xbc   : > { %vm1730_vm12 = vmpackc.low %vm455_vm7, %vm451_vm6  ;;  %vm465_vm6 = vcmp.eq.s32.totalorder %v2565_v7, %v409_v14 }
  0xbd   : > { %2060 = vmatpush3.bf16.msra.mxu1 %v2495_v43  ;;  %vm1762_vm13 = vmpackc.low %vm457_vm10, %vm453_vm9  ;;  %vm458_vm10 = vcmp.eq.s32.totalorder %v2556_v2, %v406_v15 }
  0xbe   : > { %2053 = vmatprep.subr.bf16.mxu1 %v2500_v45  ;;  %vm1732_vm5 = vmpackc.low %vm454_vm15, %vm450_vm14  ;;  %v415_v16 = vpop.permute.xlu1 %414  ;;  %v412_v17 = vpop.permute.xlu0 %411 }
  0xbf   : > { %vm1764_vm7 = vmpackc.low %vm456_vm1, %vm452_vm0  ;;  %vm467_vm14 = vcmp.eq.s32.totalorder %v2562_v6, %v412_v17  ;;  %vm471_vm15 = vcmp.eq.s32.totalorder %v2562_v6, %v415_v16  ;;  %vm469_vm1 = vcmp.eq.s32.totalorder %v2565_v7, %v412_v17 }
  0xc0   : > { %1729 = vmatmul.mubr.msk.bf16.gmra.mxu1 %vm1728_vm8, %v2299_v11  ;;  %1761 = vmatmul.mubr.msk.bf16.gmra.mxu0 %vm1760_vm11, %v2299_v11  ;;  %vm1734_vm8 = vmpackc.low %vm463_vm3, %vm459_vm2  ;;  %vm462_vm11 = vcmp.eq.s32.totalorder %v2556_v2, %v409_v14  ;;  %vm473_vm2 = vcmp.eq.s32.totalorder %v2565_v7, %v415_v16 }
  0xc1   : > { %1731 = vmatprep.mubr.msk.bf16.mxu1 %vm1730_vm12, %v2299_v11  ;;  %1763 = vmatprep.mubr.msk.bf16.mxu0 %vm1762_vm13, %v2299_v11  ;;  %vm1766_vm9 = vmpackc.low %vm465_vm6, %vm461_vm4  ;;  %vm460_vm12 = vcmp.eq.s32.totalorder %v2559_v5, %v406_v15  ;;  %vm464_vm13 = vcmp.eq.s32.totalorder %v2559_v5, %v409_v14  ;;  %vm466_vm6 = vcmp.eq.s32.totalorder %v2556_v2, %v412_v17 }
  0xc2   : > { %2061 = vmatpush3.bf16.msra.mxu1 %v2503_v46  ;;  %vm1736_vm0 = vmpackc.low %vm462_vm11, %vm458_vm10  ;;  %v421_v18 = vpop.permute.xlu1 %420  ;;  %v418_v19 = vpop.permute.xlu0 %417 }
  0xc3   : > { %2054 = vmatprep.subr.bf16.mxu1 %v2506_v47  ;;  %vm1768_vm3 = vmpackc.low %vm464_vm13, %vm460_vm12  ;;  %vm475_vm10 = vcmp.eq.s32.totalorder %v2562_v6, %v418_v19  ;;  %vm479_vm11 = vcmp.eq.s32.totalorder %v2562_v6, %v421_v18  ;;  %vm477_vm13 = vcmp.eq.s32.totalorder %v2565_v7, %v418_v19 }
  0xc4   : > { %vm1770_vm4 = vmpackc.low %vm473_vm2, %vm469_vm1  ;;  %vm474_vm2 = vcmp.eq.s32.totalorder %v2556_v2, %v418_v19 }
  0xc6   : > { %2062 = vmatpush3.bf16.msra.mxu1 %v2514_v51  ;;  %v427_v20 = vpop.permute.xlu1 %426  ;;  %v424_v21 = vpop.permute.xlu0 %423 }
  0xc7   : > { %2055 = vmatprep.subr.bf16.mxu1 %v2517_v52 }
  0xc8   : > { %1733 = vmatmul.mubr.msk.bf16.gmra.mxu1 %vm1732_vm5, %v2299_v11  ;;  %1765 = vmatmul.mubr.msk.bf16.gmra.mxu0 %vm1764_vm7, %v2299_v11  ;;  %vm1738_vm5 = vmpackc.low %vm471_vm15, %vm467_vm14  ;;  %vm470_vm7 = vcmp.eq.s32.totalorder %v2556_v2, %v415_v16  ;;  %vm481_vm14 = vcmp.eq.s32.totalorder %v2565_v7, %v421_v18 }
  0xc9   : > { %1735 = vmatprep.mubr.msk.bf16.mxu1 %vm1734_vm8, %v2299_v11  ;;  %1767 = vmatprep.mubr.msk.bf16.mxu0 %vm1766_vm9, %v2299_v11  ;;  %vm468_vm8 = vcmp.eq.s32.totalorder %v2559_v5, %v412_v17  ;;  %vm472_vm9 = vcmp.eq.s32.totalorder %v2559_v5, %v415_v16  ;;  %vm1740_vm12 = vmpackc.low %vm470_vm7, %vm466_vm6  ;;  %vm483_vm6 = vcmp.eq.s32.totalorder %v2562_v6, %v424_v21 }
  0xca   : > { %2063 = vmatpush3.bf16.msra.mxu1 %v2526_v56  ;;  %vm1772_vm15 = vmpackc.low %vm472_vm9, %vm468_vm8  ;;  %vm487_vm7 = vcmp.eq.s32.totalorder %v2562_v6, %v427_v20  ;;  %v433_v22 = vpop.permute.xlu1 %432  ;;  %v430_v23 = vpop.permute.xlu0 %429 }
  0xcb   : > { %2056 = vmatprep.subr.bf16.mxu1 %v2531_v58  ;;  %vm1774_vm1 = vmpackc.low %vm481_vm14, %vm477_vm13  ;;  %vm495_vm13 = vcmp.eq.s32.totalorder %v2562_v6, %v433_v22  ;;  %vm491_vm14 = vcmp.eq.s32.totalorder %v2562_v6, %v430_v23 }
  0xce   : > { %2064 = vmatpush3.bf16.msra.mxu1 %v2535_v59 }
  0xcf   : > { %2057 = vmatprep.subr.bf16.mxu1 %v2539_v60 }
  0xd0   : > { %1737 = vmatmul.mubr.msk.bf16.gmra.mxu1 %vm1736_vm0, %v2299_v11  ;;  %1769 = vmatmul.mubr.msk.bf16.gmra.mxu0 %vm1768_vm3, %v2299_v11  ;;  %vm1742_vm0 = vmpackc.low %vm479_vm11, %vm475_vm10  ;;  %vm478_vm3 = vcmp.eq.s32.totalorder %v2556_v2, %v421_v18  ;;  %vm482_vm11 = vcmp.eq.s32.totalorder %v2556_v2, %v424_v21 }
  0xd1   : > { %1739 = vmatprep.mubr.msk.bf16.mxu1 %vm1738_vm5, %v2299_v11  ;;  %1771 = vmatprep.mubr.msk.bf16.mxu0 %vm1770_vm4, %v2299_v11  ;;  %vm476_vm5 = vcmp.eq.s32.totalorder %v2559_v5, %v418_v19  ;;  %vm480_vm4 = vcmp.eq.s32.totalorder %v2559_v5, %v421_v18  ;;  %vm1744_vm8 = vmpackc.low %vm478_vm3, %vm474_vm2  ;;  %vm490_vm2 = vcmp.eq.s32.totalorder %v2556_v2, %v430_v23 }
  0xd2   : > { %2065 = vmatpush3.bf16.msra.mxu1 %v2544_v62  ;;  %vm1776_vm9 = vmpackc.low %vm480_vm4, %vm476_vm5  ;;  %vm485_vm3 = vcmp.eq.s32.totalorder %v2565_v7, %v424_v21  ;;  %vm489_vm5 = vcmp.eq.s32.totalorder %v2565_v7, %v427_v20 }
  0xd3   : > { %2058 = vmatprep.subr.bf16.mxu1 %v2548_v63  ;;  %vm1746_vm10 = vmpackc.low %vm487_vm7, %vm483_vm6  ;;  %vm488_vm7 = vcmp.eq.s32.totalorder %v2559_v5, %v427_v20 }
  0xd4   : > { %vm1778_vm6 = vmpackc.low %vm489_vm5, %vm485_vm3 }
  0xd6   : > { %2066 = vmatpush3.bf16.msra.mxu1 %v2552_v0 }
  0xd8   : > { %1741 = vmatmul.mubr.msk.bf16.gmra.mxu1 %vm1740_vm12, %v2299_v11  ;;  %1773 = vmatmul.mubr.msk.bf16.gmra.mxu0 %vm1772_vm15, %v2299_v11  ;;  %vm486_vm12 = vcmp.eq.s32.totalorder %v2556_v2, %v427_v20 }
  0xd9   : > { %1743 = vmatprep.mubr.msk.bf16.mxu1 %vm1742_vm0, %v2299_v11  ;;  %1775 = vmatprep.mubr.msk.bf16.mxu0 %vm1774_vm1, %v2299_v11  ;;  %vm1748_vm15 = vmpackc.low %vm486_vm12, %vm482_vm11  ;;  %vm494_vm1 = vcmp.eq.s32.totalorder %v2556_v2, %v433_v22 }
  0xda   : > { %vm1750_vm0 = vmpackc.low %vm495_vm13, %vm491_vm14  ;;  %vm496_vm13 = vcmp.eq.s32.totalorder %v2559_v5, %v433_v22  ;;  %vm492_vm14 = vcmp.eq.s32.totalorder %v2559_v5, %v430_v23 }
  0xdb   : > { %vm1752_vm4 = vmpackc.low %vm494_vm1, %vm490_vm2 }
  0xe0   : > { %1745 = vmatmul.mubr.msk.bf16.gmra.mxu1 %vm1744_vm8, %v2299_v11  ;;  %1777 = vmatmul.mubr.msk.bf16.gmra.mxu0 %vm1776_vm9, %v2299_v11  ;;  %vm484_vm8 = vcmp.eq.s32.totalorder %v2559_v5, %v424_v21  ;;  %vm497_vm9 = vcmp.eq.s32.totalorder %v2565_v7, %v433_v22 }
  0xe1   : > { %1747 = vmatprep.mubr.msk.bf16.mxu1 %vm1746_vm10, %v2299_v11  ;;  %vm493_vm10 = vcmp.eq.s32.totalorder %v2565_v7, %v430_v23  ;;  %vm1780_vm11 = vmpackc.low %vm488_vm7, %vm484_vm8 }
  0xe2   : > { %vm1782_vm12 = vmpackc.low %vm497_vm9, %vm493_vm10 }
  0xe8   : > { %1749 = vmatmul.mubr.msk.bf16.gmra.mxu1 %vm1748_vm15, %v2299_v11  ;;  %vm1784_vm15 = vmpackc.low %vm496_vm13, %vm492_vm14 }
  0xe9   : > { %1751 = vmatprep.mubr.msk.bf16.mxu1 %vm1750_vm0, %v2299_v11 }
  0xf0   : > { %1753 = vmatmul.mubr.msk.bf16.gmra.mxu1 %vm1752_vm4, %v2299_v11 }
  0xf1   : > { %1779 = vmatprep.mubr.msk.bf16.mxu1 %vm1778_vm6, %v2299_v11 }
  0xf8   : > { %1781 = vmatmul.mubr.msk.bf16.vlgmr.msra.gmra.mxu1 %vm1780_vm11, %v2299_v11 }
  0xf9   : > { %1783 = vmatprep.mubr.msk.bf16.mxu1 %vm1782_vm12, %v2299_v11 }
 0x100   : > { %1785 = vmatmul.mubr.msk.bf16.gmra.mxu1 %vm1784_vm15, %v2299_v11 }
 0x114   : > { %v2037_v24 = vpop.f32.mrf.mxu0 }
 0x115   : > { %v900_v0 = vadd.f32 %v2037_v24, %v2702_v36 }
 0x116   : > { %v891_v25 = vpop.f32.mrf.mxu0 }
 0x117   : > { %v892_v47 = vadd.f32 %v2702_v36, %v891_v25 }
 0x118   : > { %v2038_v26 = vpop.f32.mrf.mxu0 }
 0x119   : > { %v903_v10 = vadd.f32 %v2038_v26, %v2702_v36 }
 0x11a   : > { %v894_v27 = vpop.f32.mrf.mxu0 }
 0x11b   : > { %v895_v54 = vadd.f32 %v2702_v36, %v894_v27 }
 0x11c   : > { %v2684_v28 = vpop.f32.mrf.mxu0 }
 0x11e   : > { %v907_v29 = vpop.f32.mrf.mxu0 }
 0x11f   : > { %v908_v21 = vadd.f32 %v2702_v36, %v907_v29 }
 0x120   : > { %v2686_v30 = vpop.f32.mrf.mxu0 }
 0x122   : > { %v2688_v31 = vpop.f32.mrf.mxu0 }
 0x124   : > { %v2690_v32 = vpop.f32.mrf.mxu0 }
 0x126   : > { %v2692_v33 = vpop.f32.mrf.mxu0 }
 0x128   : > { %v2694_v34 = vpop.f32.mrf.mxu0 }
 0x12a   : > { %v2700_v35 = vpop.f32.mrf.mxu0 }
 0x12c   : > { %v2049_v37 = vpop.f32.mrf.mxu0 }
 0x12d   : > { %v2705_v38 = vadd.f32 %v2049_v37, %v2702_v36 }
 0x12e   : > { %v2707_v39 = vpop.f32.mrf.mxu0 }
 0x130   : > { %v2050_v40 = vpop.f32.mrf.mxu0 }
 0x131   : > { %v2710_v41 = vadd.f32 %v2050_v40, %v2702_v36 }
 0x132   : > { %v2712_v42 = vpop.f32.mrf.mxu0 }
 0x178   : > { %v1907_v43 = vpop.f32.mrf.mxu1  ;;  %v1971_v44 = vpop.f32.mrf.mxu0 }
 0x17a   : > { %v1908_v45 = vpop.f32.mrf.mxu1  ;;  %v1972_v46 = vpop.f32.mrf.mxu0 }
 0x17b   : > { %v1909_v48 = vadd.f32 %v1908_v45, %v1907_v43  ;;  %v1973_v55 = vadd.f32 %v1972_v46, %v1971_v44  ;;  %v911_v44 = vadd.f32 %v2702_v36, %v2688_v31 }
 0x17c   : > { %v1910_v49 = vpop.f32.mrf.mxu1  ;;  %v1974_v50 = vpop.f32.mrf.mxu0 }
 0x17d   : > { %v1181_v51 = vadd.f32 %v1909_v48, %v892_v47 }
 0x17e   : > { %v1911_v52 = vpop.f32.mrf.mxu1  ;;  %v1975_v53 = vpop.f32.mrf.mxu0 }
 0x17f   : > { %v1912_v56 = vadd.f32 %v1911_v52, %v1910_v49  ;;  %v1278_v59 = vadd.f32 %v1973_v55, %v1181_v51  ;;  %v1976_v61 = vadd.f32 %v1975_v53, %v1974_v50 }
 0x180   : > { %v1913_v57 = vpop.f32.mrf.mxu1  ;;  %v1977_v58 = vpop.f32.mrf.mxu0 }
 0x181   : > { %v1184_v60 = vadd.f32 %v1912_v56, %v895_v54  ;;  %v1340_v5 = vmax.f32 %v1278_v59, 0.0  ;;  %v916_v54 = vadd.f32 %v2684_v28, %v2702_v36 }
 0x182   : > { %v1914_v62 = vpop.f32.mrf.mxu1  ;;  %v1978_v63 = vpop.f32.mrf.mxu0 }
 0x183   : > { %v1281_v1 = vadd.f32 %v1976_v61, %v1184_v60  ;;  %v1915_v2 = vadd.f32 %v1914_v62, %v1913_v57  ;;  %v1979_v12 = vadd.f32 %v1978_v63, %v1977_v58  ;;  %v919_v63 = vadd.f32 %v2686_v30, %v2702_v36 }
 0x184   : > { %v1916_v3 = vpop.f32.mrf.mxu1  ;;  %v1980_v4 = vpop.f32.mrf.mxu0 }
 0x185   : > { %v1341_v6 = vmax.f32 %v1281_v1, 0.0  ;;  %v1189_v7 = vadd.f32 %v1915_v2, %v900_v0 }
 0x186   : > { %v1917_v8 = vpop.f32.mrf.mxu1  ;;  %v1981_v9 = vpop.f32.mrf.mxu0 }
 0x187   : > { %v1831_v11 = vpack.c.bf16 %v1341_v6, %v1340_v5  ;;  %v1918_v13 = vadd.f32 %v1917_v8, %v1916_v3  ;;  %v1286_v16 = vadd.f32 %v1979_v12, %v1189_v7  ;;  %v1982_v18 = vadd.f32 %v1981_v9, %v1980_v4 }
 0x188   : > { %v1919_v14 = vpop.f32.mrf.mxu1  ;;  %v1983_v15 = vpop.f32.mrf.mxu0  ;;  %v924_v9 = vadd.f32 %v2702_v36, %v2692_v33 }
 0x189   : > { %1832 = vst [vmem:[%s2719_s17] sm:$0xff] %v1831_v11   ;;  %v1192_v17 = vadd.f32 %v1918_v13, %v903_v10  ;;  %v1342_v26 = vmax.f32 %v1286_v16, 0.0 }
 0x18a   : > { %v1920_v19 = vpop.f32.mrf.mxu1  ;;  %v1984_v20 = vpop.f32.mrf.mxu0 }
 0x18b   : > { %v1289_v22 = vadd.f32 %v1982_v18, %v1192_v17  ;;  %v1921_v23 = vadd.f32 %v1920_v19, %v1919_v14  ;;  %v1985_v46 = vadd.f32 %v1984_v20, %v1983_v15  ;;  %v927_v18 = vadd.f32 %v2702_v36, %v2700_v35 }
 0x18c   : > { %v1922_v24 = vpop.f32.mrf.mxu1  ;;  %v1986_v25 = vpop.f32.mrf.mxu0 }
 0x18d   : > { %v1343_v27 = vmax.f32 %v1289_v22, 0.0  ;;  %v1197_v37 = vadd.f32 %v1921_v23, %v908_v21 }
 0x18e   : > { %v1923_v40 = vpop.f32.mrf.mxu1  ;;  %v1987_v43 = vpop.f32.mrf.mxu0 }
 0x18f   : > { %v1836_v45 = vpack.c.bf16 %v1343_v27, %v1342_v26  ;;  %v1924_v47 = vadd.f32 %v1923_v40, %v1922_v24  ;;  %v1294_v29 = vadd.f32 %v1985_v46, %v1197_v37  ;;  %v1988_v51 = vadd.f32 %v1987_v43, %v1986_v25 }
 0x190   : > { %v1925_v48 = vpop.f32.mrf.mxu1  ;;  %v1989_v49 = vpop.f32.mrf.mxu0  ;;  %v932_v37 = vadd.f32 %v2690_v32, %v2702_v36 }
 0x191   : > { %1868 = vst [vmem:[%s2719_s17 + $0x8] sm:$0xff] %v1836_v45   ;;  %v1200_v50 = vadd.f32 %v1924_v47, %v911_v44  ;;  %v1344_v31 = vmax.f32 %v1294_v29, 0.0  ;;  %v935_v29 = vadd.f32 %v2694_v34, %v2702_v36 }
 0x192   : > { %v1926_v52 = vpop.f32.mrf.mxu1  ;;  %v1990_v53 = vpop.f32.mrf.mxu0 }
 0x193   : > { %v1297_v55 = vadd.f32 %v1988_v51, %v1200_v50  ;;  %v1927_v56 = vadd.f32 %v1926_v52, %v1925_v48  ;;  %v1991_v1 = vadd.f32 %v1990_v53, %v1989_v49 }
 0x194   : > { %v1928_v57 = vpop.f32.mrf.mxu1  ;;  %v1992_v58 = vpop.f32.mrf.mxu0 }
 0x195   : > { %v1345_v59 = vmax.f32 %v1297_v55, 0.0  ;;  %v1205_v60 = vadd.f32 %v1927_v56, %v916_v54 }
 0x196   : > { %v1929_v61 = vpop.f32.mrf.mxu1  ;;  %v1993_v62 = vpop.f32.mrf.mxu0 }
 0x197   : > { %v1841_v0 = vpack.c.bf16 %v1345_v59, %v1344_v31  ;;  %v1930_v2 = vadd.f32 %v1929_v61, %v1928_v57  ;;  %v1302_v28 = vadd.f32 %v1991_v1, %v1205_v60  ;;  %v1994_v6 = vadd.f32 %v1993_v62, %v1992_v58 }
 0x198   : > { %v1931_v3 = vpop.f32.mrf.mxu1  ;;  %v1995_v4 = vpop.f32.mrf.mxu0 }
 0x199   : > { %1869 = vst [vmem:[%s2719_s17 + $0x10] sm:$0xff] %v1841_v0   ;;  %v1208_v5 = vadd.f32 %v1930_v2, %v919_v63  ;;  %v1346_v30 = vmax.f32 %v1302_v28, 0.0 }
 0x19a   : > { %v1932_v7 = vpop.f32.mrf.mxu1  ;;  %v1996_v8 = vpop.f32.mrf.mxu0 }
 0x19b   : > { %v1305_v10 = vadd.f32 %v1994_v6, %v1208_v5  ;;  %v1933_v11 = vadd.f32 %v1932_v7, %v1931_v3  ;;  %v1997_v20 = vadd.f32 %v1996_v8, %v1995_v4  ;;  %v940_v4 = vadd.f32 %v2702_v36, %v2707_v39 }
 0x19c   : > { %v1934_v12 = vpop.f32.mrf.mxu1  ;;  %v1998_v13 = vpop.f32.mrf.mxu0  ;;  %v943_v7 = vadd.f32 %v2702_v36, %v2712_v42 }
 0x19d   : > { %v1347_v14 = vmax.f32 %v1305_v10, 0.0  ;;  %v1213_v15 = vadd.f32 %v1933_v11, %v924_v9 }
 0x19e   : > { %v1935_v16 = vpop.f32.mrf.mxu1  ;;  %v1999_v17 = vpop.f32.mrf.mxu0 }
 0x19f   : > { %v1846_v19 = vpack.c.bf16 %v1347_v14, %v1346_v30  ;;  %v1936_v21 = vadd.f32 %v1935_v16, %v1934_v12  ;;  %v1310_v33 = vadd.f32 %v1997_v20, %v1213_v15  ;;  %v2000_v25 = vadd.f32 %v1999_v17, %v1998_v13 }
 0x1a0   : > { %v1937_v22 = vpop.f32.mrf.mxu1  ;;  %v2001_v23 = vpop.f32.mrf.mxu0 }
 0x1a1   : > { %1870 = vst [vmem:[%s2719_s17 + $0x18] sm:$0xff] %v1846_v19   ;;  %v1216_v24 = vadd.f32 %v1936_v21, %v927_v18  ;;  %v1348_v35 = vmax.f32 %v1310_v33, 0.0 }
 0x1a2   : > { %v1938_v26 = vpop.f32.mrf.mxu1  ;;  %v2002_v27 = vpop.f32.mrf.mxu0 }
 0x1a3   : > { %v1313_v40 = vadd.f32 %v2000_v25, %v1216_v24  ;;  %v1939_v43 = vadd.f32 %v1938_v26, %v1937_v22  ;;  %v2003_v51 = vadd.f32 %v2002_v27, %v2001_v23 }
 0x1a4   : > { %v1940_v44 = vpop.f32.mrf.mxu1  ;;  %v2004_v45 = vpop.f32.mrf.mxu0 }
 0x1a5   : > { %v1349_v46 = vmax.f32 %v1313_v40, 0.0  ;;  %v1221_v47 = vadd.f32 %v1939_v43, %v932_v37 }
 0x1a6   : > { %v1941_v48 = vpop.f32.mrf.mxu1  ;;  %v2005_v49 = vpop.f32.mrf.mxu0 }
 0x1a7   : > { %v1851_v50 = vpack.c.bf16 %v1349_v46, %v1348_v35  ;;  %v1942_v52 = vadd.f32 %v1941_v48, %v1940_v44  ;;  %v1318_v54 = vadd.f32 %v2003_v51, %v1221_v47  ;;  %v2006_v55 = vadd.f32 %v2005_v49, %v2004_v45 }
 0x1a8   : > { %v1943_v53 = vpop.f32.mrf.mxu1 }
 0x1a9   : > { %1871 = vst [vmem:[%s2719_s17 + $0x20] sm:$0xff] %v1851_v50   ;;  %v1224_v32 = vadd.f32 %v1942_v52, %v935_v29  ;;  %v1350_v31 = vmax.f32 %v1318_v54, 0.0 }
 0x1aa   : > { %v1944_v56 = vpop.f32.mrf.mxu1 }
 0x1ab   : > { %v1321_v57 = vadd.f32 %v2006_v55, %v1224_v32  ;;  %v1945_v2 = vadd.f32 %v1944_v56, %v1943_v53 }
 0x1ac   : > { %v1946_v58 = vpop.f32.mrf.mxu1 }
 0x1ad   : > { %v1351_v59 = vmax.f32 %v1321_v57, 0.0  ;;  %v1229_v8 = vadd.f32 %v1945_v2, %v940_v4 }
 0x1ae   : > { %v1947_v60 = vpop.f32.mrf.mxu1 }
 0x1af   : > { %v1856_v61 = vpack.c.bf16 %v1351_v59, %v1350_v31  ;;  %v1948_v28 = vadd.f32 %v1947_v60, %v1946_v58 }
 0x1b0   : > { %v1949_v62 = vpop.f32.mrf.mxu1 }
 0x1b1   : > { %1872 = vst [vmem:[%s2719_s17 + $0x28] sm:$0xff] %v1856_v61   ;;  %v1232_v10 = vadd.f32 %v1948_v28, %v943_v7 }
 0x1b2   : > { %v1950_v63 = vpop.f32.mrf.mxu1 }
 0x1b3   : > { %v1951_v30 = vadd.f32 %v1950_v63, %v1949_v62 }
 0x1b4   : > { %v1952_v34 = vpop.f32.mrf.mxu1 }
 0x1b5   : > { %v1237_v36 = vadd.f32 %v1951_v30, %v2705_v38 }
 0x1b6   : > { %v1953_v0 = vpop.f32.mrf.mxu1 }
 0x1b7   : > { %v1954_v16 = vadd.f32 %v1953_v0, %v1952_v34 }
 0x1b8   : > { %v2007_v1 = vpop.f32.mrf.mxu1 }
 0x1b9   : > { %v1240_v21 = vadd.f32 %v1954_v16, %v2710_v41 }
 0x1ba   : > { %v2008_v3 = vpop.f32.mrf.mxu1 }
 0x1bb   : > { %v2009_v5 = vadd.f32 %v2008_v3, %v2007_v1 }
 0x1bc   : > { %v2010_v6 = vpop.f32.mrf.mxu1 }
 0x1bd   : > { %v1326_v11 = vadd.f32 %v2009_v5, %v1229_v8 }
 0x1be   : > { %v2011_v9 = vpop.f32.mrf.mxu1 }
 0x1bf   : > { %v2012_v12 = vadd.f32 %v2011_v9, %v2010_v6  ;;  %v1352_v39 = vmax.f32 %v1326_v11, 0.0 }
 0x1c0   : > { %v2013_v13 = vpop.f32.mrf.mxu1 }
 0x1c1   : > { %v1329_v14 = vadd.f32 %v2012_v12, %v1232_v10 }
 0x1c2   : > { %v2014_v15 = vpop.f32.mrf.mxu1 }
 0x1c3   : > { %v1353_v17 = vmax.f32 %v1329_v14, 0.0  ;;  %v2015_v18 = vadd.f32 %v2014_v15, %v2013_v13 }
 0x1c4   : > { %v2016_v19 = vpop.f32.mrf.mxu1 }
 0x1c5   : > { %v1861_v42 = vpack.c.bf16 %v1353_v17, %v1352_v39  ;;  %v1334_v22 = vadd.f32 %v2015_v18, %v1237_v36 }
 0x1c6   : > { %v2017_v20 = vpop.f32.mrf.mxu1 }
 0x1c7   : > { %1873 = vst [vmem:[%s2719_s17 + $0x30] sm:$0xff] %v1861_v42   ;;  %v2018_v23 = vadd.f32 %v2017_v20, %v2016_v19  ;;  %v1354_v24 = vmax.f32 %v1334_v22, 0.0 }
 0x1c9   : > { %v1337_v33 = vadd.f32 %v2018_v23, %v1240_v21 }
 0x1cb   : > { %v1355_v25 = vmax.f32 %v1337_v33, 0.0 }
 0x1cd   : > { %v1866_v38 = vpack.c.bf16 %v1355_v25, %v1354_v24 }
 0x1cf   : > { %1874 = vst [vmem:[%s2719_s17 + $0x38] sm:$0xff] %v1866_v38  }
 0x1d0   : > { %2226 = shalt.err (!%p2223_p7)
}
 0x1d1   : > { %s2227_s13 = scalar_lea.hbm %s2754_s29, 1024  ;;  %s2231_s14 = scalar_lea.hbm %s2809_s5, 4096 }
 0x1d2   : > { %p2228_p10 = scmp.ne.s32.totalorder %s2754_s29, %s2227_s13  ;;  %p2232_p1 = scmp.lt.s32.totalorder %s2754_s29, %s2809_s5 }
 0x1d3   : > { %p2233_p13 = scmp.lt.s32.totalorder %s2231_s14, %s2227_s13 }
 0x1d4   : > { %p2229_p4 = pnand %p2228_p10, %p2384_p9 }
 0x1d5   : > { %p2234_p8 = por %p2233_p13, %p2232_p1 }
 0x1d6   : > { %p2230_p12 = pneg %p2229_p4 }
 0x1d8   : > { %p2235_p0 = pnand %p2234_p8, %p2230_p12 }
 0x1da   : > { %2238 = shalt.err (!%p2235_p0)
}
 0x1db   : > { %s2301_s30 = smov 64   ;;  %s2302_s27 = smov 4  }
 0x1dc   : > { %2069 = dma.vmem_to_hbm [thread:$0]  (%p2384_p9), %s2756_s25, 1024, %s2754_s29, %s1437_s10, %s2301_s30, %s2301_s30, %s2302_s27  }
 0x1dd PF: > { %p2080_p2 = scmp.ge.s32.totalorder %s2293_s23, 2  ;;  %s1467_s28 = sand.u32 1, %s2273_s18  }
 0x1de   : > { %s1468_s21 = scalar_lea.sflag [#allocation4], %s1467_s28 }
 0x1df   : > { %p2076_p3 = pnand %p2080_p2, %p2391_p11 }
 0x1e1   : > { %p2077_p5 = pneg %p2076_p3 }
 0x1e3   : > { %2268 = dma.done.wait (%p2077_p5), %s1468_s21, 1024  }
 0x1e4   : > { %2270 = vsyncadd (%p2077_p5), %s1468_s21, 4294966272  ;;  %s21_s23 = sadd.s32 1, %s2293_s23   ;;  %s2817_s18 = smov %s2277_s19 }
 0x1e5   : > { %p18_p6 = scmp.ge.s32.totalorder %s21_s23, 6   ;;  %s2818_s19 = smov %s2281_s20 }
 0x1e6   : > { %s2819_s20 = smov %s2389_s7  ;;  %s2820_s21 = smov %s2289_s22 }
 0x1e7   : > { %s2821_s22 = smov %s2823_s26  ;;  %20 = sbr.rel (!%p18_p6) target bundleno = 6 (0x6), region = 97 }
 0x1ec   :  { %1473 = vsyncpa [#allocation3], 1 }
 0x1ed   :  { %1475 = vsyncpa [#allocation3 + $0x1], 1 }
 0x1ee   :  { %1476 = vsyncpa [#allocation4], 1 }
 0x1ef   :  { %1478 = vsyncpa [#allocation4 + $0x1], 1 }

</bundles_post_ra>
